<compile_context>
chip_gen: v5e
topology: v5e:2x2
jax: 0.10.0
libtpu: 0.0.40
codegen_flags: <defaults>
</compile_context>

<pallas_src>
import math

import jax
import jax.numpy as jnp
from jax.experimental import pallas as pl
from jax.experimental.pallas import tpu as pltpu

_BN_EPS = 1e-5
_VMEM_LIMIT = 32 * 1024 * 1024  # explicit scoped-VMEM request (safe on v5e/v6e/v7x)


def _vmem_spec():
    return pl.BlockSpec(memory_space=pltpu.MemorySpace.VMEM)


# --------------------------------------------------------------------------- roll probe
# The 3x3 tap generation relies on pltpu.roll.  Probe its rotate direction once at
# runtime (cheap, one tiny kernel) so the conv indexing is robust across versions.

_ROLL_LIKE_JNP = None


def _roll_like_jnp():
    global _ROLL_LIKE_JNP
    if _ROLL_LIKE_JNP is None:
        def probe(x_ref, o_ref):
            o_ref[...] = pltpu.roll(x_ref[...], 1, 0)

        x = jnp.broadcast_to(jnp.arange(16, dtype=jnp.float32)[:, None], (16, 128))
        y = pl.pallas_call(
            probe,
            out_shape=jax.ShapeDtypeStruct((16, 128), jnp.float32),
            in_specs=[_vmem_spec()],
            out_specs=_vmem_spec(),
        )(x)
        first = float(y[0, 0])
        if first == 15.0:        # jnp.roll semantics: result[i] = x[i - shift]
            _ROLL_LIKE_JNP = True
        elif first == 1.0:       # flipped semantics: result[i] = x[i + shift]
            _ROLL_LIKE_JNP = False
        else:
            raise RuntimeError(f"unexpected pltpu.roll behaviour (probe={first})")
    return _ROLL_LIKE_JNP


# --------------------------------------------------------------------------- in-kernel 3x3 conv

def _conv3x3_acc(taps, w_ref, H, W, idx, ww, roll_like_jnp):
    """Accumulate sum_t shift(src_t) @ w_ref[t] in f32 on an (H*W, C) layout.

    taps[t] = (src_2d_f32, di, dj): the contribution of kernel tap t at output
    position (h, w) is src[h + di, w + dj] (zero when out of bounds), with src
    flattened row-major to (H*W, Cin).  w_ref is a (9, Cin, Cout) bf16 ref.
    """
    hw = H * W
    acc = None
    for t, (src, di, dj) in enumerate(taps):
        v = src
        s = di * W + dj
        if s != 0:
            shift = (-s) % hw if roll_like_jnp else s % hw
            v = pltpu.roll(v, shift, 0)
        valid = None
        if dj == -1:
            valid = ww > 0
        elif dj == 1:
            valid = ww < (W - 1)
        if di == -1:
            vh = idx >= W
            valid = vh if valid is None else jnp.logical_and(valid, vh)
        elif di == 1:
            vh = idx < (hw - W)
            valid = vh if valid is None else jnp.logical_and(valid, vh)
        if valid is not None:
            v = jnp.where(valid, v, jnp.zeros_like(v))
        contrib = jnp.dot(v.astype(jnp.bfloat16), w_ref[t],
                          preferred_element_type=jnp.float32)
        acc = contrib if acc is None else acc + contrib
    return acc


# --------------------------------------------------------------------------- fused block kernel

def _const_index_map(ndim):
    if ndim == 2:
        return lambda b: (0, 0)
    return lambda b: (0, 0, 0)


def _block_apply(x_flat, H, W, p, cfg):
    """Run one fused WideResNet block. x_flat: (N, H*W, C_act) f32 -> (N, Ho*Wo, Cout)."""
    stride = cfg["stride"]
    has_link = cfg["has_link"]
    front = cfg["front"]
    n, _, c_act = x_flat.shape
    ho, wo = H // stride, W // stride
    cin = p["w1"].shape[1]
    cout = p["w1"].shape[2]
    roll_like_jnp = _roll_like_jnp()

    assert (wo & (wo - 1)) == 0, "spatial width must be a power of two"
    if front:
        assert stride == 1
    if stride != 1:
        assert has_link

    if stride == 1:
        act_inputs = [x_flat]
    else:
        x4 = x_flat.reshape(n, H, W, c_act)
        act_inputs = [
            x4[:, 0::2, 0::2, :].reshape(n, ho * wo, c_act),
            x4[:, 0::2, 1::2, :].reshape(n, ho * wo, c_act),
            x4[:, 1::2, 0::2, :].reshape(n, ho * wo, c_act),
            x4[:, 1::2, 1::2, :].reshape(n, ho * wo, c_act),
        ]
    n_act = len(act_inputs)

    param_inputs = [p["s1"], p["t1"], p["w1"], p["s2"], p["t2"], p["w2"], p["bout"]]
    if has_link:
        param_inputs.append(p["wl"])
    if front:
        param_inputs += [p["wf"], p["bf"]]

    def kernel(*refs):
        act_refs = refs[:n_act]
        s1_ref, t1_ref, w1_ref, s2_ref, t2_ref, w2_ref, bo_ref = refs[n_act:n_act + 7]
        pos = n_act + 7
        wl_ref = None
        if has_link:
            wl_ref = refs[pos]
            pos += 1
        if front:
            wf_ref, bf_ref = refs[pos], refs[pos + 1]
            pos += 2
        o_ref = refs[pos]

        idx = jax.lax.broadcasted_iota(jnp.int32, (ho * wo, 1), 0)
        ww = jnp.bitwise_and(idx, wo - 1)

        s1 = s1_ref[...]
        t1 = t1_ref[...]

        if stride == 1:
            if front:
                img = act_refs[0][0]                       # (H*W, 3) f32
                taps_f = [(img, i - 1, j - 1) for i in range(3) for j in range(3)]
                x0 = _conv3x3_acc(taps_f, wf_ref, ho, wo, idx, ww,
                                  roll_like_jnp) + bf_ref[...]
            else:
                x0 = act_refs[0][0]                        # (H*W, Cin) f32
            out0 = jnp.maximum(x0 * s1 + t1, 0.0)
            taps1 = [(out0, i - 1, j - 1) for i in range(3) for j in range(3)]
            link_src = out0
        else:
            # stride-2: four spatial phases of relu(bn1(x))
            phases = [[None, None], [None, None]]
            for a in range(2):
                for b in range(2):
                    xp = act_refs[2 * a + b][0]
                    phases[a][b] = jnp.maximum(xp * s1 + t1, 0.0)
            taps1 = []
            for i in range(3):
                di = -1 if i == 0 else 0
                pr = 0 if i == 1 else 1
                for j in range(3):
                    dj = -1 if j == 0 else 0
                    pc = 0 if j == 1 else 1
                    taps1.append((phases[pr][pc], di, dj))
            link_src = phases[0][0]
            x0 = None

        acc1 = _conv3x3_acc(taps1, w1_ref, ho, wo, idx, ww, roll_like_jnp)
        # conv1 bias is pre-folded into t2; bn2 + relu epilogue in f32
        h1 = jnp.maximum(acc1 * s2_ref[...] + t2_ref[...], 0.0)
        # TODO(synk): training-mode dropout (pltpu.prng_*) not implemented; identity in eval.
        taps2 = [(h1, i - 1, j - 1) for i in range(3) for j in range(3)]
        acc2 = _conv3x3_acc(taps2, w2_ref, ho, wo, idx, ww, roll_like_jnp)

        if has_link:
            res = jnp.dot(link_src.astype(jnp.bfloat16), wl_ref[...],
                          preferred_element_type=jnp.float32)
        else:
            res = x0
        o_ref[0] = acc2 + bo_ref[...] + res

    in_specs = [pl.BlockSpec((1, a.shape[1], a.shape[2]), lambda b: (b, 0, 0))
                for a in act_inputs]
    in_specs += [pl.BlockSpec(q.shape, _const_index_map(q.ndim)) for q in param_inputs]
    out_specs = pl.BlockSpec((1, ho * wo, cout), lambda b: (b, 0, 0))

    flops = 2 * n * ho * wo * 9 * (cin * cout + cout * cout)
    if has_link:
        flops += 2 * n * ho * wo * cin * cout
    if front:
        flops += 2 * n * H * W * 9 * p["wf"].shape[1] * p["wf"].shape[2]
    bytes_accessed = int(sum(a.size * a.dtype.itemsize
                             for a in act_inputs + param_inputs)
                         + n * ho * wo * cout * 4)

    return pl.pallas_call(
        kernel,
        grid=(n,),
        in_specs=in_specs,
        out_specs=out_specs,
        out_shape=jax.ShapeDtypeStruct((n, ho * wo, cout), jnp.float32),
        compiler_params=pltpu.CompilerParams(
            dimension_semantics=("parallel",),
            vmem_limit_bytes=_VMEM_LIMIT,
        ),
        cost_estimate=pl.CostEstimate(
            flops=int(flops), transcendentals=0, bytes_accessed=bytes_accessed),
    )(*act_inputs, *param_inputs)


# --------------------------------------------------------------------------- head kernel

def _head_kernel(x_ref, s_ref, t_ref, w_ref, b_ref, o_ref):
    # relu(bn(x)), global avg-pool (1/64 folded into w), FC — all fused.
    a = jnp.maximum(x_ref[...] * s_ref[...] + t_ref[...], 0.0)   # (N, HW, C)
    pooled = jnp.sum(a, axis=1)                                   # (N, C)
    o_ref[...] = jnp.dot(pooled, w_ref[...],
                         preferred_element_type=jnp.float32) + b_ref[...]


def _head_apply(x_flat, kp):
    n = x_flat.shape[0]
    ncls = kp["h_w"].shape[1]
    return pl.pallas_call(
        _head_kernel,
        out_shape=jax.ShapeDtypeStruct((n, ncls), jnp.float32),
        in_specs=[_vmem_spec()] * 5,
        out_specs=_vmem_spec(),
        compiler_params=pltpu.CompilerParams(vmem_limit_bytes=_VMEM_LIMIT),
    )(x_flat, kp["h_s"], kp["h_t"], kp["h_w"], kp["h_b"])


# --------------------------------------------------------------------------- forward

def wideresnet_forward(x_nchw, kparams, config):
    # Input follows the PyTorch NCHW convention; kernels use a flattened NHWC layout.
    x = jnp.transpose(x_nchw, (0, 2, 3, 1)).astype(jnp.float32)
    n, H, W, c = x.shape
    x = x.reshape(n, H * W, c)
    for p, cfg in zip(kparams["blocks"], config):
        x = _block_apply(x, H, W, p, cfg)
        H //= cfg["stride"]
        W //= cfg["stride"]
    # F.avg_pool2d(x, 8) + flatten + fc requires an 8x8 final feature map (32x32 input).
    assert H == 8 and W == 8, "WideResNet head expects an 8x8 final feature map"
    return _head_apply(x, kparams)


# --------------------------------------------------------------------------- parameters

def _kaiming_normal(key, shape, fan_in):
    return math.sqrt(2.0 / fan_in) * jax.random.normal(key, shape, jnp.float32)


def make_wideresnet_params(key, depth=10, width=1, n_classes=10):
    """Raw parameters matching the PyTorch module's init (eval mode)."""
    assert (depth - 4) % 6 == 0, "Wide-resnet depth should be 6n+4"
    n = (depth - 4) // 6
    widths = [int(v * width) for v in (16, 32, 64)]
    n_blocks = 3 * n
    keys = jax.random.split(key, 3 + 5 * n_blocks)
    ki = iter(range(len(keys)))

    raw = {
        "conv1_w": _kaiming_normal(keys[next(ki)], (3, 3, 3, 16), 3 * 9),
        "conv1_b": jnp.zeros((16,), jnp.float32),
        "blocks": [],
    }
    inplanes = 16
    for outplanes, stage_stride in zip(widths, (1, 2, 2)):
        for b in range(n):
            stride = stage_stride if b == 0 else 1
            blk = {
                "stride": stride,
                "bn1_gamma": jax.random.uniform(keys[next(ki)], (inplanes,), jnp.float32),
                "bn1_beta": jnp.zeros((inplanes,), jnp.float32),
                "conv1_w": _kaiming_normal(keys[next(ki)], (3, 3, inplanes, outplanes),
                                           inplanes * 9),
                "conv1_b": jnp.zeros((outplanes,), jnp.float32),
                "bn2_gamma": jax.random.uniform(keys[next(ki)], (outplanes,), jnp.float32),
                "bn2_beta": jnp.zeros((outplanes,), jnp.float32),
                "conv2_w": _kaiming_normal(keys[next(ki)], (3, 3, outplanes, outplanes),
                                           outplanes * 9),
                "conv2_b": jnp.zeros((outplanes,), jnp.float32),
            }
            if inplanes == outplanes and stride == 1:
                blk["link_w"] = None
                blk["link_b"] = None
                next(ki)
            else:
                blk["link_w"] = _kaiming_normal(keys[next(ki)],
                                                (1, 1, inplanes, outplanes), inplanes)
                blk["link_b"] = jnp.zeros((outplanes,), jnp.float32)
            raw["blocks"].append(blk)
            inplanes = outplanes

    raw["bn_gamma"] = jax.random.uniform(keys[next(ki)], (widths[-1],), jnp.float32)
    raw["bn_beta"] = jnp.zeros((widths[-1],), jnp.float32)
    raw["fc_w"] = _kaiming_normal(keys[next(ki)], (widths[-1], n_classes), widths[-1])
    raw["fc_b"] = jnp.zeros((n_classes,), jnp.float32)
    return raw


def _bn_affine(gamma, beta):
    # Eval-mode BatchNorm with running_mean=0, running_var=1.
    # TODO(synk): for a trained checkpoint fold real running stats here
    # (scale = gamma/sqrt(var+eps), shift = beta - mean*scale).
    scale = gamma / jnp.sqrt(1.0 + _BN_EPS)
    return scale, beta


def prepare_kernel_params(raw):
    """Derive fused / bf16 kernel-side parameters + static per-block config."""
    kp = {"blocks": []}
    config = []
    for bi, blk in enumerate(raw["blocks"]):
        cin = blk["conv1_w"].shape[2]
        cout = blk["conv1_w"].shape[3]
        s1, t1 = _bn_affine(blk["bn1_gamma"], blk["bn1_beta"])
        s2, t2 = _bn_affine(blk["bn2_gamma"], blk["bn2_beta"])
        d = {
            "s1": s1.reshape(1, cin),
            "t1": t1.reshape(1, cin),
            "w1": blk["conv1_w"].reshape(9, cin, cout).astype(jnp.bfloat16),
            "s2": s2.reshape(1, cout),
            # conv1 bias folded into the bn2 affine shift
            "t2": (blk["conv1_b"] * s2 + t2).reshape(1, cout),
            "w2": blk["conv2_w"].reshape(9, cout, cout).astype(jnp.bfloat16),
        }
        bout = blk["conv2_b"]
        has_link = blk["link_w"] is not None
        if has_link:
            d["wl"] = blk["link_w"].reshape(cin, cout).astype(jnp.bfloat16)
            bout = bout + blk["link_b"]
        d["bout"] = bout.reshape(1, cout)
        front = bi == 0
        if front:
            cf = raw["conv1_w"].shape
            d["wf"] = raw["conv1_w"].reshape(9, cf[2], cf[3]).astype(jnp.bfloat16)
            d["bf"] = raw["conv1_b"].reshape(1, cf[3])
        kp["blocks"].append(d)
        config.append({"stride": blk["stride"], "has_link": has_link, "front": front})

    s, t = _bn_affine(raw["bn_gamma"], raw["bn_beta"])
    c = s.shape[0]
    kp["h_s"] = s.reshape(1, 1, c)
    kp["h_t"] = t.reshape(1, 1, c)
    kp["h_w"] = raw["fc_w"] / 64.0    # fold the 8x8 average pool into the FC weight
    kp["h_b"] = raw["fc_b"].reshape(1, -1)
    return kp, tuple(config)


# --------------------------------------------------------------------------- pure-JAX reference

def _conv_ref(x, w, b, stride, pad):
    y = jax.lax.conv_general_dilated(
        x.astype(jnp.bfloat16), w.astype(jnp.bfloat16),
        window_strides=(stride, stride),
        padding=((pad, pad), (pad, pad)),
        dimension_numbers=("NHWC", "HWIO", "NHWC"),
        preferred_element_type=jnp.float32)
    return y + b


def wideresnet_reference(x_nchw, raw):
    x = jnp.transpose(x_nchw, (0, 2, 3, 1)).astype(jnp.float32)
    x = _conv_ref(x, raw["conv1_w"], raw["conv1_b"], 1, 1)
    for blk in raw["blocks"]:
        s1, t1 = _bn_affine(blk["bn1_gamma"], blk["bn1_beta"])
        out0 = jnp.maximum(x * s1 + t1, 0.0)
        out = _conv_ref(out0, blk["conv1_w"], blk["conv1_b"], blk["stride"], 1)
        s2, t2 = _bn_affine(blk["bn2_gamma"], blk["bn2_beta"])
        out = jnp.maximum(out * s2 + t2, 0.0)
        out = _conv_ref(out, blk["conv2_w"], blk["conv2_b"], 1, 1)
        if blk["link_w"] is None:
            x = out + x
        else:
            x = out + _conv_ref(out0, blk["link_w"], blk["link_b"], blk["stride"], 0)
    s, t = _bn_affine(raw["bn_gamma"], raw["bn_beta"])
    x = jnp.maximum(x * s + t, 0.0)
    pooled = jnp.mean(x, axis=(1, 2))
    return jnp.dot(pooled, raw["fc_w"],
                   precision=jax.lax.Precision.HIGHEST) + raw["fc_b"]


# --------------------------------------------------------------------------- main

if __name__ == "__main__":
    key = jax.random.PRNGKey(0)
    pkey, xkey = jax.random.split(key)

    # WideResNet(depth=10, width=1, dropout_rate=0.0, n_classes=10), eval mode.
    raw = make_wideresnet_params(pkey, depth=10, width=1, n_classes=10)
    kparams, config = prepare_kernel_params(raw)

    # Smallest input compatible with avg_pool2d(x, 8): 32x32 RGB, NCHW like PyTorch.
    x = jax.random.normal(xkey, (2, 3, 32, 32), jnp.float32)

    _roll_like_jnp()  # warm the rotate-direction probe outside the jit trace

    fwd = jax.jit(lambda inp, kp: wideresnet_forward(inp, kp, config))
    logits = jax.block_until_ready(fwd(x, kparams))
    assert logits.shape == (2, 10)
    assert bool(jnp.all(jnp.isfinite(logits)))

    ref = wideresnet_reference(x, raw)
    if not bool(jnp.allclose(logits, ref, rtol=2e-2, atol=2e-2)):
        raise AssertionError(
            "Pallas forward disagrees with pure-JAX reference: "
            f"max|diff|={float(jnp.max(jnp.abs(logits - ref)))}")
    print("KERNEL_OK")
</pallas_src>

<mosaic_0001>
module attributes {stable_mosaic.version = 11 : i64} {
  func.func @probe(%arg0: memref<16x128xf32, #tpu.memory_space<vmem>>, %arg1: memref<16x128xf32, #tpu.memory_space<vmem>>) attributes {dimension_semantics = [], scalar_prefetch = 0 : i64, scratch_operands = 0 : i64, tpu.core_type = #tpu.core_type<tc>} {
    %c0 = arith.constant 0 : index
    %c0_0 = arith.constant 0 : index
    %0 = vector.load %arg0[%c0, %c0_0] : memref<16x128xf32, #tpu.memory_space<vmem>>, vector<16x128xf32>
    %c1_i32 = arith.constant 1 : i32
    %1 = tpu.dynamic_rotate %0 by %c1_i32 dim 0 : vector<16x128xf32>, i32 -> vector<16x128xf32>
    %c0_1 = arith.constant 0 : index
    %c0_2 = arith.constant 0 : index
    %2 = vector.load %arg1[%c0_1, %c0_2] : memref<16x128xf32, #tpu.memory_space<vmem>>, vector<16x128xf32>
    tpu.vector_store %arg1[%c0_1, %c0_2], %1 {strides = array<i32>} : memref<16x128xf32, #tpu.memory_space<vmem>>, vector<16x128xf32>,
    return
  }
}

</mosaic_0001>

<bundles_post_ra>
// kernel: tpu_custom_call.1
= control target key start
LH: loop header
LB: loop body
LE: loop exit
PB: predicated region body
PF: predicated region fallthrough
CT: control target
= control target key end

     0   :  { %6 = vsyncpa [#allocation3], 0  ;;  %s131_s0 = inlined_call_operand.hbm [shape: f32[16,128], index: 0, kind: input, shape index: {}]   ;;  %s132_s1 = inlined_call_operand.hbm [shape: f32[16,128], index: 1, kind: output, shape index: {}]  }
   0x1   :  { %7 = vsyncpa [#allocation4], 0  ;;  %s12_s8 = sshll.u32 %s131_s0, 4  ;;  %s111_s9 = smov [#allocation2]   ;;  %s13_s8 = int_to_ptr.hbm [resolvable:$true] %s12_s8 }
   0x2   :  { %s14_s10 = sshll.u32 %s111_s9, 4  ;;  %s112_s11 = smov 128   ;;  %s15_s10 = int_to_ptr.vmem [resolvable:$true] %s14_s10 }
   0x3   :  { %s113_s12 = smov 8  }
   0x4   :  { %20 = dma.hbm_to_vmem [thread:$0]  %s13_s8, 256, %s15_s10, [#allocation3], %s112_s11, %s112_s11, %s113_s12  }
   0x5   :  { %107 = dma.done.wait [#allocation3], 256  }
   0x6   :  { %108 = vsyncadd [#allocation3], 4294967040  ;;  %v29_v0 = vlaneseq  ;;  %v25_v2 = vld [vmem:[#allocation2] sm:$0xff]  ;;  %v26_v3 = vld [vmem:[#allocation2 + $0x8] sm:$0xff]  ;;  %s114_s13 = smov [#allocation5]   ;;  %s42_s0 = sshll.u32 %s132_s1, 4  ;;  %s43_s0 = int_to_ptr.hbm [resolvable:$true] %s42_s0 }
   0x7   :  { %s40_s14 = sshll.u32 %s114_s13, 4  ;;  %v27_v4 = vrot.slane %v25_v2, 7  ;;  %v28_v5 = vrot.slane %v26_v3, 7  ;;  %s41_s14 = int_to_ptr.vmem [resolvable:$true] %s40_s14 }
   0x8   :  { %v30_v1 = vshrl.u32 %v29_v0, 7 }
   0xa   :  { %vm31_vm0 = vcmp.lt.s32.totalorder %v30_v1, 1 }
   0xb   :  { %v33_v6 = vsel %vm31_vm0, %v28_v5, %v27_v4  ;;  %v32_v7 = vsel %vm31_vm0, %v27_v4, %v28_v5 }
   0xc   :  { %34 = vst [vmem:[#allocation5] sm:$0xff] %v33_v6 }
   0xd   :  { %35 = vst [vmem:[#allocation5 + $0x8] sm:$0xff] %v32_v7 }
   0xe   :  { %48 = dma.vmem_to_hbm [thread:$0]  %s41_s14, 256, %s43_s0, [#allocation4], %s112_s11, %s112_s11, %s113_s12  }
   0xf   :  { %109 = dma.done.wait [#allocation4], 256  }
  0x10   :  { %110 = vsyncadd [#allocation4], 4294967040 }
  0x11   :  { %53 = vsyncpa [#allocation3], 1 }
  0x12   :  { %54 = vsyncpa [#allocation4], 1 }

</bundles_post_ra>
